<compile_context>
chip_gen: v7x
topology: tpu7x:2x2x1
jax: 0.10.0
libtpu: 0.0.40
codegen_flags: <defaults>
</compile_context>

<pallas_src>
import functools

import jax
import jax.numpy as jnp
from jax.experimental import pallas as pl
from jax.experimental.pallas import tpu as pltpu


def _round_up(x, m):
    return (x + m - 1) // m * m


def _extract_patches_nhwc(xp, k, stride, d):
    """im2col of an (edge-)padded NHWC tensor at dilation d.

    Returns ([N*OH*OW, k*k*C], OH, OW) with the K axis ordered (kh, kw, c)."""
    N, Hp, Wp, C = xp.shape
    OH = (Hp - d * (k - 1) - 1) // stride + 1
    OW = (Wp - d * (k - 1) - 1) // stride + 1
    cols = []
    for i in range(k):
        for j in range(k):
            sl = xp[:, i * d: i * d + stride * (OH - 1) + 1: stride,
                    j * d: j * d + stride * (OW - 1) + 1: stride, :]  # [N,OH,OW,C]
            cols.append(sl)
    p = jnp.concatenate(cols, axis=-1)  # [N, OH, OW, k*k*C], K ordered (kh, kw, c)
    return p.reshape(N * OH * OW, k * k * C), OH, OW


def _myconv_kernel(p_ref, w_ref, b_ref, o_ref):
    # [TM, Kp] bf16 @ [Kp, Op] bf16 -> f32 accumulate on the MXU; bias add in f32;
    # lane-dense (Op = multiple of 128) unmasked store.
    acc = jnp.dot(p_ref[...], w_ref[...], preferred_element_type=jnp.float32)
    o_ref[...] = acc + b_ref[...]


def my_conv_forward(x, weight, bias, kernel, *, tile_m=512):
    """Pallas implementation of MyConv.forward.

    x: [N, C, H, W] float32 (NCHW, like PyTorch)
    weight: [O, C, k, k], bias: [O]
    Returns [N, O, OH, OW] float32.
    """
    stride = kernel
    N, C, H, W = x.shape
    O = weight.shape[0]
    k = kernel

    # Single layout transpose of the input (NCHW -> NHWC); downstream im2col is pure
    # slicing + concat, avoiding a big strided 6-D transpose.
    x_nhwc = jnp.transpose(x, (0, 2, 3, 1))

    patches = []
    oh = ow = None
    for d in (1, 2, 3):
        pad = d - 1  # padding1=(0,0), padding2=(1,1), padding3=(2,2); replicate mode
        xp = x_nhwc if pad == 0 else jnp.pad(
            x_nhwc, ((0, 0), (pad, pad), (pad, pad), (0, 0)), mode="edge")
        p, oh_d, ow_d = _extract_patches_nhwc(xp, k, stride, d)
        if oh is None:
            oh, ow = oh_d, ow_d
        else:
            assert (oh, ow) == (oh_d, ow_d), "branch output sizes differ (need kernel==3)"
        patches.append(p)

    # Fuse the three branch matmuls: P = [P1 | P2 | P3], W3 = [Wm; Wm; Wm], bias -> 3*bias.
    P = jnp.concatenate(patches, axis=1)                                # [M, 3*k*k*C]
    w_mat = jnp.transpose(weight, (2, 3, 1, 0)).reshape(k * k * C, O)    # K=(kh,kw,c)
    W3 = jnp.concatenate([w_mat, w_mat, w_mat], axis=0)                  # [3*k*k*C, O]

    M, K3 = P.shape
    # Zero-pad to lane/sublane-friendly sizes (numerically exact).
    Kp = _round_up(K3, 128)
    Op = _round_up(O, 128)
    tm = min(tile_m, _round_up(M, 8))      # multiple of 8; 512 fits VMEM on v5e/v6e/v7x
    Mp = _round_up(M, tm)

    P_pad = jnp.zeros((Mp, Kp), jnp.bfloat16).at[:M, :K3].set(P.astype(jnp.bfloat16))
    W_pad = jnp.zeros((Kp, Op), jnp.bfloat16).at[:K3, :O].set(W3.astype(jnp.bfloat16))
    b_pad = jnp.zeros((1, Op), jnp.float32).at[0, :O].set(
        3.0 * bias.astype(jnp.float32))

    n_tiles = Mp // tm
    cost = pl.CostEstimate(
        flops=2 * Mp * Kp * Op,
        transcendentals=0,
        bytes_accessed=P_pad.size * 2 + W_pad.size * 2 + b_pad.size * 4 + Mp * Op * 4,
    )

    out_flat = pl.pallas_call(
        _myconv_kernel,
        out_shape=jax.ShapeDtypeStruct((Mp, Op), jnp.float32),
        grid=(n_tiles,),
        in_specs=[
            pl.BlockSpec((tm, Kp), lambda i: (i, 0)),   # patch tile, pipelined over M
            pl.BlockSpec((Kp, Op), lambda i: (0, 0)),   # fused weight, VMEM-resident
            pl.BlockSpec((1, Op), lambda i: (0, 0)),    # 3*bias, VMEM-resident
        ],
        out_specs=pl.BlockSpec((tm, Op), lambda i: (i, 0)),
        compiler_params=pltpu.CompilerParams(
            dimension_semantics=("parallel",)),          # shards M tiles across v7x's 2 TCs
        cost_estimate=cost,
    )(P_pad, W_pad, b_pad)

    # [M, O] (row-major over n, oh, ow) -> [N, O, OH, OW] to match PyTorch NCHW output.
    out = out_flat[:M, :O].reshape(N, oh, ow, O)
    return jnp.transpose(out, (0, 3, 1, 2))


def _reference(x, weight, bias, kernel):
    """Plain-JAX f32 reference matching the PyTorch forward, for validation."""
    stride = kernel
    outs = []
    for d in (1, 2, 3):
        pad = d - 1
        xp = x if pad == 0 else jnp.pad(
            x, ((0, 0), (0, 0), (pad, pad), (pad, pad)), mode="edge")
        o = jax.lax.conv_general_dilated(
            xp, weight, window_strides=(stride, stride), padding="VALID",
            rhs_dilation=(d, d), dimension_numbers=("NCHW", "OIHW", "NCHW"))
        outs.append(o + bias[None, :, None, None])
    return outs[0] + outs[1] + outs[2]


if __name__ == "__main__":
    # Small, MyConv-consistent shapes: kernel=3 (required so the three dilated branches
    # share the same output spatial size), stride=kernel.  H=W=48 -> 16x16 outputs,
    # M = 4*16*16 = 1024 rows -> two 512-row tiles (exercises the pipelined grid).
    batch, in_feature, out_feature, kernel = 4, 4, 8, 3
    H = W = 48

    key = jax.random.PRNGKey(0)
    kx, kw = jax.random.split(key)
    x = jax.random.normal(kx, (batch, in_feature, H, W), dtype=jnp.float32)
    weight = jax.random.normal(
        kw, (out_feature, in_feature, kernel, kernel), dtype=jnp.float32)
    bias = jnp.zeros((out_feature,), dtype=jnp.float32)  # torch.zeros(out_feature)

    fwd = jax.jit(functools.partial(my_conv_forward, kernel=kernel))
    out = fwd(x, weight, bias)
    out = jax.block_until_ready(out)

    ref = _reference(x, weight, bias, kernel)
    assert out.shape == ref.shape, (out.shape, ref.shape)
    # bf16 MXU operands with f32 accumulation: allow bf16-level tolerance.
    assert jnp.allclose(out, ref, rtol=5e-2, atol=5e-1), "mismatch vs reference"

    print("KERNEL_OK")
</pallas_src>

<mosaic_0001>
module attributes {stable_mosaic.version = 11 : i64} {
  func.func @_myconv_kernel(%arg0: i32, %arg1: memref<512x128xbf16, #tpu.memory_space<vmem>>, %arg2: memref<128x128xbf16, #tpu.memory_space<vmem>>, %arg3: memref<1x128xf32, #tpu.memory_space<vmem>>, %arg4: memref<512x128xf32, #tpu.memory_space<vmem>>) attributes {dimension_semantics = [#tpu.dimension_semantics<parallel>], iteration_bounds = array<i64: 2>, scalar_prefetch = 0 : i64, scratch_operands = 0 : i64, tpu.core_type = #tpu.core_type<tc>, window_params = [{transform_indices = @transform_0, window_bounds = array<i64: 512, 128>}, {pipeline_mode = #tpu.pipeline_mode<synchronous>, transform_indices = @transform_1, window_bounds = array<i64: 128, 128>}, {pipeline_mode = #tpu.pipeline_mode<synchronous>, transform_indices = @transform_2, window_bounds = array<i64: 1, 128>}, {transform_indices = @transform_3, window_bounds = array<i64: 512, 128>}]} {
    %c0 = arith.constant 0 : index
    %c0_0 = arith.constant 0 : index
    %0 = vector.load %arg1[%c0, %c0_0] : memref<512x128xbf16, #tpu.memory_space<vmem>>, vector<512x128xbf16>
    %c0_1 = arith.constant 0 : index
    %c0_2 = arith.constant 0 : index
    %1 = vector.load %arg2[%c0_1, %c0_2] : memref<128x128xbf16, #tpu.memory_space<vmem>>, vector<128x128xbf16>
    %cst = arith.constant dense<0.000000e+00> : vector<512x128xf32>
    %2 = tpu.matmul %0, %1, %cst {dimension_numbers = #tpu.dot_dimension_numbers<[1], [0], [0], [1], [0, 0, 1, 1], [], []>} : vector<512x128xbf16>, vector<128x128xbf16>, vector<512x128xf32> -> vector<512x128xf32>
    %c0_3 = arith.constant 0 : index
    %c0_4 = arith.constant 0 : index
    %3 = vector.load %arg3[%c0_3, %c0_4] : memref<1x128xf32, #tpu.memory_space<vmem>>, vector<1x128xf32>
    %4 = vector.broadcast %3 : vector<1x128xf32> to vector<512x128xf32>
    %5 = arith.addf %2, %4 : vector<512x128xf32>
    %c0_5 = arith.constant 0 : index
    %c0_6 = arith.constant 0 : index
    %6 = vector.load %arg4[%c0_5, %c0_6] : memref<512x128xf32, #tpu.memory_space<vmem>>, vector<512x128xf32>
    tpu.vector_store %arg4[%c0_5, %c0_6], %5 {strides = array<i32>} : memref<512x128xf32, #tpu.memory_space<vmem>>, vector<512x128xf32>,
    return
  }
  func.func @transform_0(%arg0: i32) -> (i32, i32) {
    %c0_i32 = arith.constant 0 : i32
    %c0_i32_0 = arith.constant 0 : i32
    return %arg0, %c0_i32 : i32, i32
  }
  func.func @transform_1(%arg0: i32) -> (i32, i32) {
    %c0_i32 = arith.constant 0 : i32
    %c0_i32_0 = arith.constant 0 : i32
    %c0_i32_1 = arith.constant 0 : i32
    return %c0_i32, %c0_i32_0 : i32, i32
  }
  func.func @transform_2(%arg0: i32) -> (i32, i32) {
    %c0_i32 = arith.constant 0 : i32
    %c0_i32_0 = arith.constant 0 : i32
    %c0_i32_1 = arith.constant 0 : i32
    return %c0_i32, %c0_i32_0 : i32, i32
  }
  func.func @transform_3(%arg0: i32) -> (i32, i32) {
    %c0_i32 = arith.constant 0 : i32
    %c0_i32_0 = arith.constant 0 : i32
    return %arg0, %c0_i32 : i32, i32
  }
}

</mosaic_0001>

<bundles_post_ra>
// kernel: my_conv_forward.1
= control target key start
LH: loop header
LB: loop body
LE: loop exit
PB: predicated region body
PF: predicated region fallthrough
CT: control target
= control target key end

     0   :  { %s1175_s12 = smov 0   ;;  %s1389_s0 = inlined_call_operand.vmem [shape: bf16[1024,128], index: 0, kind: input, shape index: {}]   ;;  %s1390_s1 = inlined_call_operand.vmem [shape: bf16[128,128], index: 1, kind: input, shape index: {}]   ;;  %s1391_s2 = inlined_call_operand.vmem [shape: f32[1,128], index: 2, kind: input, shape index: {}]   ;;  %s1392_s3 = inlined_call_operand.vmem [shape: f32[1024,128], index: 3, kind: output, shape index: {}]  }
   0x1 LB: > { %s911_s13 = sadd.s32 4294967295, %s1153_s12   ;;  %p915_p0 = scmp.ge.s32.totalorder %s1153_s12, 1  ;;  %s1153_s12 = sphi %s1175_s12, %s13_s12  }
   0x2   : > { %p138_p1 = scmp.lt.s32.totalorder %s1153_s12, 3 }
   0x4   : > { %p139_p2 = pnand %p915_p0, %p138_p1 }
   0x5   : > { %v1107_v0 = vld [vmem:[%s1390_s1] sm:$0xff] (!%p139_p2)   ;;  %s916_s16 = sshll.u32 (!%p139_p2), %s911_s13, 6  ;;  %v1108_v1 = vld [vmem:[%s1390_s1 + $0x8] sm:$0xff] (!%p139_p2)   ;;  %v1109_v2 = vld [vmem:[%s1390_s1 + $0x10] sm:$0xff] (!%p139_p2)  }
   0x6   : > { %142 = sbr.rel (%p139_p2) target bundleno = 312 (0x138), region = 32  ;;  %p163_p3 = scmp.lt.s32.totalorder (!%p139_p2), %s916_s16, 127  ;;  %1003 = vmatprep.subr.bf16.mxu0 (!%p139_p2), %v1107_v0  ;;  %1083 = vmatprep.subr.bf16.mxu1 (!%p139_p2), %v1107_v0  ;;  %v1110_v3 = vld [vmem:[%s1390_s1 + $0x18] sm:$0xff] (!%p139_p2)   ;;  %v1111_v6 = vld [vmem:[%s1390_s1 + $0x20] sm:$0xff] (!%p139_p2)   ;;  %v1112_v7 = vld [vmem:[%s1390_s1 + $0x28] sm:$0xff] (!%p139_p2)  }
   0x7   : > { %1004 = vmatpush3.bf16.msra.mxu0 (!%p139_p2), %v1107_v0  ;;  %1091 = vmatpush3.bf16.msra.mxu1 (!%p139_p2), %v1107_v0  ;;  %v1113_v8 = vld [vmem:[%s1390_s1 + $0x30] sm:$0xff] (!%p139_p2)   ;;  %v1114_v9 = vld [vmem:[%s1390_s1 + $0x38] sm:$0xff] (!%p139_p2)   ;;  %v1251_v40 = vld [vmem:[%s1391_s2] ss:$0 sm:$0xff] (!%p139_p2) }
   0x8   : > { %1005 = vmatprep.subr.bf16.mxu0 (!%p139_p2), %v1108_v1  ;;  %1084 = vmatprep.subr.bf16.mxu1 (!%p139_p2), %v1108_v1 }
   0xb   : > { %1006 = vmatpush3.bf16.msra.mxu0 (!%p139_p2), %v1108_v1  ;;  %1092 = vmatpush3.bf16.msra.mxu1 (!%p139_p2), %v1108_v1 }
   0xc   : > { %1007 = vmatprep.subr.bf16.mxu0 (!%p139_p2), %v1109_v2  ;;  %1085 = vmatprep.subr.bf16.mxu1 (!%p139_p2), %v1109_v2 }
   0xd   : > { %s1394_s16 = smov (!%p163_p3, %s916_s16), 127 }
   0xe   : > { %s917_s21 = sshll.u32 %s1394_s16, 2  ;;  %s919_s8 = sshll.u32 %s1394_s16, 3 }
   0xf   : > { %s1198_s24 = scalar_lea.vmem %s1389_s0, %s917_s21  ;;  %1008 = vmatpush3.bf16.msra.mxu0 %v1109_v2  ;;  %1093 = vmatpush3.bf16.msra.mxu1 %v1109_v2  ;;  %s1256_s14 = scalar_lea.vmem %s1392_s3, %s919_s8 }
  0x10   : > { %v1115_v4 = vld [vmem:[%s1198_s24] sm:$0xff]   ;;  %1009 = vmatprep.subr.bf16.mxu0 %v1110_v3  ;;  %1086 = vmatprep.subr.bf16.mxu1 %v1110_v3  ;;  %v1117_v10 = vld [vmem:[%s1198_s24 + $0x8] sm:$0xff]   ;;  %v1119_v12 = vld [vmem:[%s1198_s24 + $0x10] sm:$0xff]  }
  0x11   : > { %v1116_v5 = vld [vmem:[%s1198_s24 + $0x80] sm:$0xff]   ;;  %1019 = vmatprep.mubr.bf16.mxu0 %v1115_v4  ;;  %v1118_v11 = vld [vmem:[%s1198_s24 + $0x88] sm:$0xff]   ;;  %v1120_v13 = vld [vmem:[%s1198_s24 + $0x90] sm:$0xff]  }
  0x12   : > { %1051 = vmatprep.mubr.bf16.mxu1 %v1116_v5  ;;  %v1121_v14 = vld [vmem:[%s1198_s24 + $0x18] sm:$0xff]   ;;  %v1123_v16 = vld [vmem:[%s1198_s24 + $0x20] sm:$0xff]   ;;  %v1125_v18 = vld [vmem:[%s1198_s24 + $0x28] sm:$0xff]  }
  0x13   : > { %1010 = vmatpush3.bf16.msra.mxu0 %v1110_v3  ;;  %1094 = vmatpush3.bf16.msra.mxu1 %v1110_v3  ;;  %v1122_v15 = vld [vmem:[%s1198_s24 + $0x98] sm:$0xff]   ;;  %v1124_v17 = vld [vmem:[%s1198_s24 + $0xa0] sm:$0xff]   ;;  %v1126_v19 = vld [vmem:[%s1198_s24 + $0xa8] sm:$0xff]  }
  0x14   : > { %1011 = vmatprep.subr.bf16.mxu0 %v1111_v6  ;;  %1087 = vmatprep.subr.bf16.mxu1 %v1111_v6  ;;  %v1127_v20 = vld [vmem:[%s1198_s24 + $0x30] sm:$0xff]   ;;  %v1129_v22 = vld [vmem:[%s1198_s24 + $0x38] sm:$0xff]   ;;  %v1131_v24 = vld [vmem:[%s1198_s24 + $0x40] sm:$0xff]  }
  0x15   : > { %v1128_v21 = vld [vmem:[%s1198_s24 + $0xb0] sm:$0xff]   ;;  %v1130_v23 = vld [vmem:[%s1198_s24 + $0xb8] sm:$0xff]   ;;  %v1132_v25 = vld [vmem:[%s1198_s24 + $0xc0] sm:$0xff]  }
  0x16   : > { %v1133_v26 = vld [vmem:[%s1198_s24 + $0x48] sm:$0xff]   ;;  %v1135_v28 = vld [vmem:[%s1198_s24 + $0x50] sm:$0xff]   ;;  %v1137_v30 = vld [vmem:[%s1198_s24 + $0x58] sm:$0xff]  }
  0x17   : > { %1012 = vmatpush3.bf16.msra.mxu0 %v1111_v6  ;;  %1095 = vmatpush3.bf16.msra.mxu1 %v1111_v6  ;;  %v1134_v27 = vld [vmem:[%s1198_s24 + $0xc8] sm:$0xff]   ;;  %v1136_v29 = vld [vmem:[%s1198_s24 + $0xd0] sm:$0xff]   ;;  %v1138_v31 = vld [vmem:[%s1198_s24 + $0xd8] sm:$0xff]  }
  0x18   : > { %1013 = vmatprep.subr.bf16.mxu0 %v1112_v7  ;;  %1088 = vmatprep.subr.bf16.mxu1 %v1112_v7  ;;  %v1139_v32 = vld [vmem:[%s1198_s24 + $0x60] sm:$0xff]   ;;  %v1141_v34 = vld [vmem:[%s1198_s24 + $0x68] sm:$0xff]   ;;  %v1143_v36 = vld [vmem:[%s1198_s24 + $0x70] sm:$0xff]  }
  0x19   : > { %v1140_v33 = vld [vmem:[%s1198_s24 + $0xe0] sm:$0xff]   ;;  %v1142_v35 = vld [vmem:[%s1198_s24 + $0xe8] sm:$0xff]   ;;  %v1144_v37 = vld [vmem:[%s1198_s24 + $0xf0] sm:$0xff]  }
  0x1a   : > { %v1145_v38 = vld [vmem:[%s1198_s24 + $0x78] sm:$0xff]  }
  0x1b   : > { %1014 = vmatpush3.bf16.msra.mxu0 %v1112_v7  ;;  %1096 = vmatpush3.bf16.msra.mxu1 %v1112_v7  ;;  %v1146_v39 = vld [vmem:[%s1198_s24 + $0xf8] sm:$0xff]  }
  0x1c   : > { %1015 = vmatprep.subr.bf16.mxu0 %v1113_v8  ;;  %1089 = vmatprep.subr.bf16.mxu1 %v1113_v8 }
  0x1f   : > { %1016 = vmatpush3.bf16.msra.mxu0 %v1113_v8  ;;  %1097 = vmatpush3.bf16.msra.mxu1 %v1113_v8 }
  0x20   : > { %1017 = vmatprep.subr.bf16.mxu0 %v1114_v9  ;;  %1090 = vmatprep.subr.bf16.mxu1 %v1114_v9 }
  0x23   : > { %1018 = vmatpush3.bf16.msra.mxu0 %v1114_v9  ;;  %1098 = vmatpush3.bf16.msra.mxu1 %v1114_v9 }
  0x26   : > { %1020 = vmatmul.mubr.bf16.vlgmr.msra.gmra.mrb[0].mxu0 %v1117_v10  ;;  %1052 = vmatmul.mubr.bf16.vlgmr.msra.gmra.mrb[0].mxu1 %v1118_v11 }
  0x27   : > { %1023 = vmatprep.mubr.bf16.mxu0 %v1119_v12  ;;  %1055 = vmatprep.mubr.bf16.mxu1 %v1120_v13 }
  0x2e   : > { %1024 = vmatmul.mubr.bf16.gmra.mrb[4].mxu0 %v1121_v14  ;;  %1056 = vmatmul.mubr.bf16.gmra.mrb[4].mxu1 %v1122_v15 }
  0x2f   : > { %1027 = vmatprep.mubr.bf16.mxu0 %v1123_v16  ;;  %1059 = vmatprep.mubr.bf16.mxu1 %v1124_v17 }
  0x36   : > { %1028 = vmatmul.mubr.bf16.gmra.mrb[8].mxu0 %v1125_v18  ;;  %1060 = vmatmul.mubr.bf16.gmra.mrb[8].mxu1 %v1126_v19 }
  0x37   : > { %1031 = vmatprep.mubr.bf16.mxu0 %v1127_v20  ;;  %1063 = vmatprep.mubr.bf16.mxu1 %v1128_v21 }
  0x3e   : > { %1032 = vmatmul.mubr.bf16.gmra.mrb[12].mxu0 %v1129_v22  ;;  %1064 = vmatmul.mubr.bf16.gmra.mrb[12].mxu1 %v1130_v23 }
  0x3f   : > { %1035 = vmatprep.mubr.bf16.mxu0 %v1131_v24  ;;  %1067 = vmatprep.mubr.bf16.mxu1 %v1132_v25 }
  0x46   : > { %1036 = vmatmul.mubr.bf16.gmra.mrb[16].mxu0 %v1133_v26  ;;  %1068 = vmatmul.mubr.bf16.gmra.mrb[16].mxu1 %v1134_v27 }
  0x47   : > { %1039 = vmatprep.mubr.bf16.mxu0 %v1135_v28  ;;  %1071 = vmatprep.mubr.bf16.mxu1 %v1136_v29 }
  0x4e   : > { %1040 = vmatmul.mubr.bf16.gmra.mrb[20].mxu0 %v1137_v30  ;;  %1072 = vmatmul.mubr.bf16.gmra.mrb[20].mxu1 %v1138_v31 }
  0x4f   : > { %1043 = vmatprep.mubr.bf16.mxu0 %v1139_v32  ;;  %1075 = vmatprep.mubr.bf16.mxu1 %v1140_v33 }
  0x56   : > { %1044 = vmatmul.mubr.bf16.gmra.mrb[24].mxu0 %v1141_v34  ;;  %1076 = vmatmul.mubr.bf16.gmra.mrb[24].mxu1 %v1142_v35 }
  0x57   : > { %1047 = vmatprep.mubr.bf16.mxu0 %v1143_v36  ;;  %1079 = vmatprep.mubr.bf16.mxu1 %v1144_v37 }
  0x5e   : > { %1048 = vmatmul.mubr.bf16.gmra.mrb[28].mxu0 %v1145_v38  ;;  %1080 = vmatmul.mubr.bf16.gmra.mrb[28].mxu1 %v1146_v39 }
  0xf9   : > { %v1021_v41 = vpop.f32.mrb[0].mxu0  ;;  %v1053_v42 = vpop.f32.mrb[0].mxu1 }
  0xfa   : > { %v545_v43 = vadd.f32 %v1021_v41, %v1251_v40  ;;  %v673_v44 = vadd.f32 %v1053_v42, %v1251_v40  ;;  %v536_v45 = vpop.f32.mrb[1].mxu0  ;;  %v664_v46 = vpop.f32.mrb[1].mxu1 }
  0xfb   : > { %v537_v47 = vadd.f32 %v1251_v40, %v536_v45  ;;  %v665_v48 = vadd.f32 %v1251_v40, %v664_v46  ;;  %v1022_v49 = vpop.f32.mrb[2].mxu0  ;;  %v1054_v50 = vpop.f32.mrb[2].mxu1 }
  0xfc   : > { %793 = vst [vmem:[%s1256_s14 + $0x10] sm:$0xff] %v545_v43  ;;  %825 = vst [vmem:[%s1256_s14 + $0x110] sm:$0xff] %v673_v44  ;;  %v548_v51 = vadd.f32 %v1022_v49, %v1251_v40  ;;  %v676_v52 = vadd.f32 %v1054_v50, %v1251_v40  ;;  %v539_v53 = vpop.f32.mrb[3].mxu0  ;;  %v667_v54 = vpop.f32.mrb[3].mxu1 }
  0xfd   : > { %791 = vst [vmem:[%s1256_s14] sm:$0xff] %v537_v47  ;;  %823 = vst [vmem:[%s1256_s14 + $0x100] sm:$0xff] %v665_v48  ;;  %v540_v55 = vadd.f32 %v1251_v40, %v539_v53  ;;  %v668_v56 = vadd.f32 %v1251_v40, %v667_v54 }
  0xfe   : > { %794 = vst [vmem:[%s1256_s14 + $0x18] sm:$0xff] %v548_v51  ;;  %826 = vst [vmem:[%s1256_s14 + $0x118] sm:$0xff] %v676_v52 }
  0xff   : > { %792 = vst [vmem:[%s1256_s14 + $0x8] sm:$0xff] %v540_v55  ;;  %824 = vst [vmem:[%s1256_s14 + $0x108] sm:$0xff] %v668_v56 }
 0x101   : > { %v1025_v57 = vpop.f32.mrb[4].mxu0  ;;  %v1057_v58 = vpop.f32.mrb[4].mxu1 }
 0x102   : > { %v561_v59 = vadd.f32 %v1025_v57, %v1251_v40  ;;  %v689_v60 = vadd.f32 %v1057_v58, %v1251_v40  ;;  %v552_v61 = vpop.f32.mrb[5].mxu0  ;;  %v680_v62 = vpop.f32.mrb[5].mxu1 }
 0x103   : > { %v553_v63 = vadd.f32 %v1251_v40, %v552_v61  ;;  %v681_v0 = vadd.f32 %v1251_v40, %v680_v62  ;;  %v1026_v1 = vpop.f32.mrb[6].mxu0  ;;  %v1058_v2 = vpop.f32.mrb[6].mxu1 }
 0x104   : > { %797 = vst [vmem:[%s1256_s14 + $0x30] sm:$0xff] %v561_v59  ;;  %829 = vst [vmem:[%s1256_s14 + $0x130] sm:$0xff] %v689_v60  ;;  %v564_v3 = vadd.f32 %v1026_v1, %v1251_v40  ;;  %v692_v4 = vadd.f32 %v1058_v2, %v1251_v40  ;;  %v555_v5 = vpop.f32.mrb[7].mxu0  ;;  %v683_v6 = vpop.f32.mrb[7].mxu1 }
 0x105   : > { %795 = vst [vmem:[%s1256_s14 + $0x20] sm:$0xff] %v553_v63  ;;  %827 = vst [vmem:[%s1256_s14 + $0x120] sm:$0xff] %v681_v0  ;;  %v556_v7 = vadd.f32 %v1251_v40, %v555_v5  ;;  %v684_v8 = vadd.f32 %v1251_v40, %v683_v6 }
 0x106   : > { %798 = vst [vmem:[%s1256_s14 + $0x38] sm:$0xff] %v564_v3  ;;  %830 = vst [vmem:[%s1256_s14 + $0x138] sm:$0xff] %v692_v4 }
 0x107   : > { %796 = vst [vmem:[%s1256_s14 + $0x28] sm:$0xff] %v556_v7  ;;  %828 = vst [vmem:[%s1256_s14 + $0x128] sm:$0xff] %v684_v8 }
 0x109   : > { %v1029_v9 = vpop.f32.mrb[8].mxu0  ;;  %v1061_v10 = vpop.f32.mrb[8].mxu1 }
 0x10a   : > { %v577_v11 = vadd.f32 %v1029_v9, %v1251_v40  ;;  %v705_v12 = vadd.f32 %v1061_v10, %v1251_v40  ;;  %v568_v13 = vpop.f32.mrb[9].mxu0  ;;  %v696_v14 = vpop.f32.mrb[9].mxu1 }
 0x10b   : > { %v569_v15 = vadd.f32 %v1251_v40, %v568_v13  ;;  %v697_v16 = vadd.f32 %v1251_v40, %v696_v14  ;;  %v1030_v17 = vpop.f32.mrb[10].mxu0  ;;  %v1062_v18 = vpop.f32.mrb[10].mxu1 }
 0x10c   : > { %801 = vst [vmem:[%s1256_s14 + $0x50] sm:$0xff] %v577_v11  ;;  %833 = vst [vmem:[%s1256_s14 + $0x150] sm:$0xff] %v705_v12  ;;  %v580_v19 = vadd.f32 %v1030_v17, %v1251_v40  ;;  %v708_v20 = vadd.f32 %v1062_v18, %v1251_v40  ;;  %v571_v21 = vpop.f32.mrb[11].mxu0  ;;  %v699_v22 = vpop.f32.mrb[11].mxu1 }
 0x10d   : > { %799 = vst [vmem:[%s1256_s14 + $0x40] sm:$0xff] %v569_v15  ;;  %831 = vst [vmem:[%s1256_s14 + $0x140] sm:$0xff] %v697_v16  ;;  %v572_v23 = vadd.f32 %v1251_v40, %v571_v21  ;;  %v700_v24 = vadd.f32 %v1251_v40, %v699_v22 }
 0x10e   : > { %802 = vst [vmem:[%s1256_s14 + $0x58] sm:$0xff] %v580_v19  ;;  %834 = vst [vmem:[%s1256_s14 + $0x158] sm:$0xff] %v708_v20 }
 0x10f   : > { %800 = vst [vmem:[%s1256_s14 + $0x48] sm:$0xff] %v572_v23  ;;  %832 = vst [vmem:[%s1256_s14 + $0x148] sm:$0xff] %v700_v24 }
 0x111   : > { %v1033_v25 = vpop.f32.mrb[12].mxu0  ;;  %v1065_v26 = vpop.f32.mrb[12].mxu1 }
 0x112   : > { %v593_v27 = vadd.f32 %v1033_v25, %v1251_v40  ;;  %v721_v28 = vadd.f32 %v1065_v26, %v1251_v40  ;;  %v584_v29 = vpop.f32.mrb[13].mxu0  ;;  %v712_v30 = vpop.f32.mrb[13].mxu1 }
 0x113   : > { %v585_v31 = vadd.f32 %v1251_v40, %v584_v29  ;;  %v713_v32 = vadd.f32 %v1251_v40, %v712_v30  ;;  %v1034_v33 = vpop.f32.mrb[14].mxu0  ;;  %v1066_v34 = vpop.f32.mrb[14].mxu1 }
 0x114   : > { %805 = vst [vmem:[%s1256_s14 + $0x70] sm:$0xff] %v593_v27  ;;  %837 = vst [vmem:[%s1256_s14 + $0x170] sm:$0xff] %v721_v28  ;;  %v596_v35 = vadd.f32 %v1034_v33, %v1251_v40  ;;  %v724_v36 = vadd.f32 %v1066_v34, %v1251_v40  ;;  %v587_v37 = vpop.f32.mrb[15].mxu0  ;;  %v715_v38 = vpop.f32.mrb[15].mxu1 }
 0x115   : > { %803 = vst [vmem:[%s1256_s14 + $0x60] sm:$0xff] %v585_v31  ;;  %835 = vst [vmem:[%s1256_s14 + $0x160] sm:$0xff] %v713_v32  ;;  %v588_v39 = vadd.f32 %v1251_v40, %v587_v37  ;;  %v716_v41 = vadd.f32 %v1251_v40, %v715_v38 }
 0x116   : > { %806 = vst [vmem:[%s1256_s14 + $0x78] sm:$0xff] %v596_v35  ;;  %838 = vst [vmem:[%s1256_s14 + $0x178] sm:$0xff] %v724_v36 }
 0x117   : > { %804 = vst [vmem:[%s1256_s14 + $0x68] sm:$0xff] %v588_v39  ;;  %836 = vst [vmem:[%s1256_s14 + $0x168] sm:$0xff] %v716_v41 }
 0x119   : > { %v1037_v42 = vpop.f32.mrb[16].mxu0  ;;  %v1069_v43 = vpop.f32.mrb[16].mxu1 }
 0x11a   : > { %v609_v44 = vadd.f32 %v1037_v42, %v1251_v40  ;;  %v737_v45 = vadd.f32 %v1069_v43, %v1251_v40  ;;  %v600_v46 = vpop.f32.mrb[17].mxu0  ;;  %v728_v47 = vpop.f32.mrb[17].mxu1 }
 0x11b   : > { %v601_v48 = vadd.f32 %v1251_v40, %v600_v46  ;;  %v729_v49 = vadd.f32 %v1251_v40, %v728_v47  ;;  %v1038_v50 = vpop.f32.mrb[18].mxu0  ;;  %v1070_v51 = vpop.f32.mrb[18].mxu1 }
 0x11c   : > { %809 = vst [vmem:[%s1256_s14 + $0x90] sm:$0xff] %v609_v44  ;;  %841 = vst [vmem:[%s1256_s14 + $0x190] sm:$0xff] %v737_v45  ;;  %v612_v52 = vadd.f32 %v1038_v50, %v1251_v40  ;;  %v740_v53 = vadd.f32 %v1070_v51, %v1251_v40  ;;  %v603_v54 = vpop.f32.mrb[19].mxu0  ;;  %v731_v55 = vpop.f32.mrb[19].mxu1 }
 0x11d   : > { %807 = vst [vmem:[%s1256_s14 + $0x80] sm:$0xff] %v601_v48  ;;  %839 = vst [vmem:[%s1256_s14 + $0x180] sm:$0xff] %v729_v49  ;;  %v604_v56 = vadd.f32 %v1251_v40, %v603_v54  ;;  %v732_v57 = vadd.f32 %v1251_v40, %v731_v55 }
 0x11e   : > { %810 = vst [vmem:[%s1256_s14 + $0x98] sm:$0xff] %v612_v52  ;;  %842 = vst [vmem:[%s1256_s14 + $0x198] sm:$0xff] %v740_v53 }
 0x11f   : > { %808 = vst [vmem:[%s1256_s14 + $0x88] sm:$0xff] %v604_v56  ;;  %840 = vst [vmem:[%s1256_s14 + $0x188] sm:$0xff] %v732_v57 }
 0x121   : > { %v1041_v58 = vpop.f32.mrb[20].mxu0  ;;  %v1073_v59 = vpop.f32.mrb[20].mxu1 }
 0x122   : > { %v625_v60 = vadd.f32 %v1041_v58, %v1251_v40  ;;  %v753_v61 = vadd.f32 %v1073_v59, %v1251_v40  ;;  %v616_v62 = vpop.f32.mrb[21].mxu0  ;;  %v744_v63 = vpop.f32.mrb[21].mxu1 }
 0x123   : > { %v617_v0 = vadd.f32 %v1251_v40, %v616_v62  ;;  %v745_v1 = vadd.f32 %v1251_v40, %v744_v63  ;;  %v1042_v2 = vpop.f32.mrb[22].mxu0  ;;  %v1074_v3 = vpop.f32.mrb[22].mxu1 }
 0x124   : > { %813 = vst [vmem:[%s1256_s14 + $0xb0] sm:$0xff] %v625_v60  ;;  %845 = vst [vmem:[%s1256_s14 + $0x1b0] sm:$0xff] %v753_v61  ;;  %v628_v4 = vadd.f32 %v1042_v2, %v1251_v40  ;;  %v756_v5 = vadd.f32 %v1074_v3, %v1251_v40  ;;  %v619_v6 = vpop.f32.mrb[23].mxu0  ;;  %v747_v7 = vpop.f32.mrb[23].mxu1 }
 0x125   : > { %811 = vst [vmem:[%s1256_s14 + $0xa0] sm:$0xff] %v617_v0  ;;  %843 = vst [vmem:[%s1256_s14 + $0x1a0] sm:$0xff] %v745_v1  ;;  %v620_v8 = vadd.f32 %v1251_v40, %v619_v6  ;;  %v748_v9 = vadd.f32 %v1251_v40, %v747_v7 }
 0x126   : > { %814 = vst [vmem:[%s1256_s14 + $0xb8] sm:$0xff] %v628_v4  ;;  %846 = vst [vmem:[%s1256_s14 + $0x1b8] sm:$0xff] %v756_v5 }
 0x127   : > { %812 = vst [vmem:[%s1256_s14 + $0xa8] sm:$0xff] %v620_v8  ;;  %844 = vst [vmem:[%s1256_s14 + $0x1a8] sm:$0xff] %v748_v9 }
 0x129   : > { %v1045_v10 = vpop.f32.mrb[24].mxu0  ;;  %v1077_v11 = vpop.f32.mrb[24].mxu1 }
 0x12a   : > { %v641_v12 = vadd.f32 %v1045_v10, %v1251_v40  ;;  %v769_v13 = vadd.f32 %v1077_v11, %v1251_v40  ;;  %v632_v14 = vpop.f32.mrb[25].mxu0  ;;  %v760_v15 = vpop.f32.mrb[25].mxu1 }
 0x12b   : > { %v633_v16 = vadd.f32 %v1251_v40, %v632_v14  ;;  %v761_v17 = vadd.f32 %v1251_v40, %v760_v15  ;;  %v1046_v18 = vpop.f32.mrb[26].mxu0  ;;  %v1078_v19 = vpop.f32.mrb[26].mxu1 }
 0x12c   : > { %817 = vst [vmem:[%s1256_s14 + $0xd0] sm:$0xff] %v641_v12  ;;  %849 = vst [vmem:[%s1256_s14 + $0x1d0] sm:$0xff] %v769_v13  ;;  %v644_v20 = vadd.f32 %v1046_v18, %v1251_v40  ;;  %v772_v21 = vadd.f32 %v1078_v19, %v1251_v40  ;;  %v635_v22 = vpop.f32.mrb[27].mxu0  ;;  %v763_v23 = vpop.f32.mrb[27].mxu1 }
 0x12d   : > { %815 = vst [vmem:[%s1256_s14 + $0xc0] sm:$0xff] %v633_v16  ;;  %847 = vst [vmem:[%s1256_s14 + $0x1c0] sm:$0xff] %v761_v17  ;;  %v636_v24 = vadd.f32 %v1251_v40, %v635_v22  ;;  %v764_v25 = vadd.f32 %v1251_v40, %v763_v23 }
 0x12e   : > { %818 = vst [vmem:[%s1256_s14 + $0xd8] sm:$0xff] %v644_v20  ;;  %850 = vst [vmem:[%s1256_s14 + $0x1d8] sm:$0xff] %v772_v21 }
 0x12f   : > { %816 = vst [vmem:[%s1256_s14 + $0xc8] sm:$0xff] %v636_v24  ;;  %848 = vst [vmem:[%s1256_s14 + $0x1c8] sm:$0xff] %v764_v25 }
 0x131   : > { %v1049_v26 = vpop.f32.mrb[28].mxu0  ;;  %v1081_v27 = vpop.f32.mrb[28].mxu1 }
 0x132   : > { %v657_v28 = vadd.f32 %v1049_v26, %v1251_v40  ;;  %v785_v29 = vadd.f32 %v1081_v27, %v1251_v40  ;;  %v648_v30 = vpop.f32.mrb[29].mxu0  ;;  %v776_v31 = vpop.f32.mrb[29].mxu1 }
 0x133   : > { %v649_v32 = vadd.f32 %v1251_v40, %v648_v30  ;;  %v777_v33 = vadd.f32 %v1251_v40, %v776_v31  ;;  %v1050_v34 = vpop.f32.mrb[30].mxu0  ;;  %v1082_v35 = vpop.f32.mrb[30].mxu1 }
 0x134   : > { %821 = vst [vmem:[%s1256_s14 + $0xf0] sm:$0xff] %v657_v28  ;;  %853 = vst [vmem:[%s1256_s14 + $0x1f0] sm:$0xff] %v785_v29  ;;  %v660_v36 = vadd.f32 %v1050_v34, %v1251_v40  ;;  %v788_v37 = vadd.f32 %v1082_v35, %v1251_v40  ;;  %v651_v38 = vpop.f32.mrb[31].mxu0  ;;  %v779_v39 = vpop.f32.mrb[31].mxu1 }
 0x135   : > { %819 = vst [vmem:[%s1256_s14 + $0xe0] sm:$0xff] %v649_v32  ;;  %851 = vst [vmem:[%s1256_s14 + $0x1e0] sm:$0xff] %v777_v33  ;;  %v652_v41 = vadd.f32 %v1251_v40, %v651_v38  ;;  %v780_v42 = vadd.f32 %v1251_v40, %v779_v39 }
 0x136   : > { %822 = vst [vmem:[%s1256_s14 + $0xf8] sm:$0xff] %v660_v36  ;;  %854 = vst [vmem:[%s1256_s14 + $0x1f8] sm:$0xff] %v788_v37 }
 0x137   : > { %820 = vst [vmem:[%s1256_s14 + $0xe8] sm:$0xff] %v652_v41  ;;  %852 = vst [vmem:[%s1256_s14 + $0x1e8] sm:$0xff] %v780_v42 }
 0x138 PF: > { %s13_s12 = sadd.s32 1, %s1153_s12  }
 0x139   : > { %p10_p4 = scmp.ge.s32.totalorder %s13_s12, 4  }
 0x13b   :  { %12 = sbr.rel (!%p10_p4) target bundleno = 1 (0x1), region = 62 }

</bundles_post_ra>
